<compile_context>
chip_gen: v6e
topology: v6e:2x2x1
jax: 0.10.0
libtpu: 0.0.40
codegen_flags: <defaults>
</compile_context>

<pallas_src>
import functools

import jax
import jax.numpy as jnp
from jax import lax
from jax.experimental import pallas as pl
from jax.experimental.pallas import tpu as pltpu

EPS = 1e-5
LANE = 128
_INV_SQRT2 = 0.7071067811865476


def _gelu(x, approx=False):
    # PyTorch nn.GELU() default (approximate='none'): 0.5*x*(1+erf(x/sqrt(2))).
    # approx=True uses the tanh form (runs on the EUP slot) - changes numerics.
    if approx:
        return jax.nn.gelu(x, approximate=True)
    return 0.5 * x * (1.0 + lax.erf(x * _INV_SQRT2))


def _layernorm(x, w, b):
    # LayerNorm over last axis, biased variance, eps=1e-5 (PyTorch semantics).
    mu = jnp.mean(x, axis=-1, keepdims=True)
    var = jnp.mean((x - mu) * (x - mu), axis=-1, keepdims=True)
    return (x - mu) * lax.rsqrt(var + EPS) * w + b


def _mixer_block_kernel(
    x_ref,            # (Bb, N, D)
    ln1_w, ln1_b,     # (1, D)
    w1, b1,           # (N, Tp), (1, Tp)   token-mix Linear(N -> T) weight^T, bias (padded)
    w2, b2,           # (Tp, N), (1, N)    token-mix Linear(T -> N) weight^T, bias
    ln2_w, ln2_b,     # (1, D)
    w3, b3,           # (D, Cp), (1, Cp)   channel-mix Linear(D -> C) weight^T, bias (padded)
    w4, b4,           # (Cp, D), (1, D)    channel-mix Linear(C -> D) weight^T, bias
    o_ref,            # (Bb, N, D)
    *, bb, n, d, mm_dtype, approx_gelu,
):
    x = x_ref[...].astype(jnp.float32)                              # (Bb, N, D)

    # ---- token mixer: one block transpose, folded 2-D MXU dots ----
    y = _layernorm(x, ln1_w[...], ln1_b[...])                       # (Bb, N, D)
    yT = jnp.swapaxes(y, 1, 2).reshape(bb * d, n)                   # (Bb*D, N)
    h = jnp.dot(yT.astype(mm_dtype), w1[...],
                preferred_element_type=jnp.float32) + b1[...]       # (Bb*D, Tp)
    h = _gelu(h, approx_gelu)
    t = jnp.dot(h.astype(mm_dtype), w2[...],
                preferred_element_type=jnp.float32) + b2[...]       # (Bb*D, N)
    x1 = x + jnp.swapaxes(t.reshape(bb, d, n), 1, 2)                # (Bb, N, D)

    # ---- channel mixer: folded input is just a leading-dim reshape ----
    z = _layernorm(x1, ln2_w[...], ln2_b[...]).reshape(bb * n, d)   # (Bb*N, D)
    h2 = jnp.dot(z.astype(mm_dtype), w3[...],
                 preferred_element_type=jnp.float32) + b3[...]      # (Bb*N, Cp)
    h2 = _gelu(h2, approx_gelu)
    c = jnp.dot(h2.astype(mm_dtype), w4[...],
                preferred_element_type=jnp.float32) + b4[...]       # (Bb*N, D)

    # Single lane-dense 3-D store.
    o_ref[...] = (x1 + c.reshape(bb, n, d)).astype(o_ref.dtype)


def _round_up(v, m):
    return ((v + m - 1) // m) * m


def _vmem_capacity_bytes():
    try:
        return int(pltpu.get_tpu_info().vmem_capacity_bytes)
    except Exception:          # pure feature probe; conservative v7x default
        return 64 * 2**20


def _act_bytes(bb, N, D, Tp, Cp):
    # f32 in-kernel working set (x, y/z, h, t, x1, h2, c + transpose copies).
    return 4 * bb * (6 * N * D + 2 * D * Tp + 2 * N * Cp)


def _pick_bb(B, N, D, Tp, Cp, vmem_cap):
    """Largest batch fold dividing B that fits the (generation-aware) budget.

    Maximizing bb fills MXU rows (target >=256 on v6e/v7x, >=128 on v5e) and
    amortizes the ~0.35us per-grid-step overhead; grid length is kept >= 2 when
    possible so the 'parallel' axis can split across v7x's two TensorCores.
    """
    act_budget = max(4 * 2**20, vmem_cap // 6)   # ~21 MiB on 128 MiB, ~10 MiB on 64 MiB
    fitting = [c for c in range(1, B + 1)
               if B % c == 0 and _act_bytes(c, N, D, Tp, Cp) <= act_budget]
    if not fitting:
        return 1
    bb = max(fitting)
    if B // bb < 2 and B >= 2:
        two_step = [c for c in fitting if B // c >= 2]
        if two_step:
            bb = max(two_step)
    return bb


def _probe_buffered():
    # Feature-detect pl.Buffered / BlockSpec(pipeline_mode=...) once at import.
    if not hasattr(pl, "Buffered"):
        return False
    try:
        pl.BlockSpec((8, 128), lambda g: (0, 0), pipeline_mode=pl.Buffered(1))
        return True
    except Exception:
        return False


_HAS_BUFFERED = _probe_buffered()


def mixer_block(x, params, *, use_bf16_matmul=True, approx_gelu=False,
                pad_hidden=True, bb=None):
    B, N, D = x.shape
    (ln1_w, ln1_b, w1, b1, w2, b2, ln2_w, ln2_b, w3, b3, w4, b4) = params
    T = w1.shape[1]
    C = w3.shape[1]

    # ---- lane-pad hidden dims T, C (zero pads => bit-exact results) ----
    Tp = _round_up(T, LANE) if pad_hidden else T
    Cp = _round_up(C, LANE) if pad_hidden else C
    if Tp != T:
        w1 = jnp.pad(w1, ((0, 0), (0, Tp - T)))
        b1 = jnp.pad(b1, ((0, 0), (0, Tp - T)))
        w2 = jnp.pad(w2, ((0, Tp - T), (0, 0)))
    if Cp != C:
        w3 = jnp.pad(w3, ((0, 0), (0, Cp - C)))
        b3 = jnp.pad(b3, ((0, 0), (0, Cp - C)))
        w4 = jnp.pad(w4, ((0, Cp - C), (0, 0)))

    vmem_cap = _vmem_capacity_bytes()
    if bb is None:
        bb = _pick_bb(B, N, D, Tp, Cp, vmem_cap)
    assert B % bb == 0

    # bf16 MXU operands (weights cast in HBM: halves weight DMA + VMEM);
    # accumulation and all elementwise math stay f32 (v5e-safe).
    mm_dtype = jnp.bfloat16 if use_bf16_matmul else jnp.float32
    w1c, w2c, w3c, w4c = (w.astype(mm_dtype) for w in (w1, w2, w3, w4))
    f32 = lambda p: p.astype(jnp.float32)
    kparams = (f32(ln1_w), f32(ln1_b), w1c, f32(b1), w2c, f32(b2),
               f32(ln2_w), f32(ln2_b), w3c, f32(b3), w4c, f32(b4))

    # ---- generation-aware VMEM budget (no double counting) ----
    itemsz = x.dtype.itemsize
    wbytes = sum(int(p.size) * p.dtype.itemsize for p in kparams)
    w_resident = (1 if _HAS_BUFFERED else 2) * wbytes       # single- vs double-buffered weights
    io_bytes = 2 * 2 * bb * N * D * itemsz                  # double-buffered x + out blocks
    need = w_resident + io_bytes + _act_bytes(bb, N, D, Tp, Cp)
    vmem_limit = int(min(max(16 * 2**20, int(1.3 * need)), int(0.85 * vmem_cap)))

    # Advisory cost estimate for XLA scheduling around the kernel.
    cost = pl.CostEstimate(
        flops=4 * B * N * D * (Tp + Cp),
        transcendentals=B * (D * Tp + N * Cp),
        bytes_accessed=2 * B * N * D * itemsz + wbytes,
    )

    kernel = functools.partial(_mixer_block_kernel, bb=bb, n=N, d=D,
                               mm_dtype=mm_dtype, approx_gelu=approx_gelu)
    grid = (B // bb,)
    x_spec = pl.BlockSpec((bb, N, D), lambda g: (g, 0, 0))
    out_spec = pl.BlockSpec((bb, N, D), lambda g: (g, 0, 0))

    def build(single_buffer_weights):
        def wspec(p):
            idx = lambda g, _nd=p.ndim: (0,) * _nd          # constant across grid
            if single_buffer_weights:
                return pl.BlockSpec(p.shape, idx, pipeline_mode=pl.Buffered(1))
            return pl.BlockSpec(p.shape, idx)

        return pl.pallas_call(
            kernel,
            out_shape=jax.ShapeDtypeStruct((B, N, D), x.dtype),
            grid_spec=pltpu.PrefetchScalarGridSpec(
                num_scalar_prefetch=0,
                grid=grid,
                in_specs=[x_spec] + [wspec(p) for p in kparams],
                out_specs=out_spec,
            ),
            compiler_params=pltpu.CompilerParams(
                dimension_semantics=("parallel",),
                vmem_limit_bytes=vmem_limit,
            ),
            cost_estimate=cost,
        )

    if _HAS_BUFFERED:
        try:
            return build(True)(x, *kparams)
        except (pltpu.LoweringException, NotImplementedError, TypeError, ValueError):
            # Narrow fallback: only if Buffered(1) is rejected by this JAX/Mosaic
            # version.  A genuine shape/lowering bug will re-raise from build(False).
            pass
    return build(False)(x, *kparams)


def mixer_block_ref(x, params):
    (ln1_w, ln1_b, w1, b1, w2, b2, ln2_w, ln2_b, w3, b3, w4, b4) = params
    y = _layernorm(x, ln1_w, ln1_b)                                 # (B, N, D)
    yT = jnp.swapaxes(y, 1, 2)                                      # (B, D, N)
    h = _gelu(jnp.einsum("bdn,nt->bdt", yT, w1) + b1)               # (B, D, T)
    t = jnp.einsum("bdt,tn->bdn", h, w2) + b2                       # (B, D, N)
    x = x + jnp.swapaxes(t, 1, 2)
    z = _layernorm(x, ln2_w, ln2_b)
    h2 = _gelu(jnp.einsum("bnd,dc->bnc", z, w3) + b3)               # (B, N, C)
    c = jnp.einsum("bnc,cd->bnd", h2, w4) + b4                      # (B, N, D)
    return x + c


if __name__ == "__main__":
    B, N, D = 2, 8, 32          # batch, num_patch, dim
    T, C = 16, 64               # token_dim, channel_dim

    key = jax.random.PRNGKey(0)
    ks = jax.random.split(key, 10)

    x = jax.random.normal(ks[0], (B, N, D), dtype=jnp.float32)

    # LayerNorm params (PyTorch init weight=1, bias=0), perturbed for a non-trivial test.
    ln1_w = jnp.ones((1, D), jnp.float32) + 0.01 * jax.random.normal(ks[1], (1, D))
    ln1_b = 0.01 * jax.random.normal(ks[2], (1, D))
    ln2_w = jnp.ones((1, D), jnp.float32) + 0.01 * jax.random.normal(ks[3], (1, D))
    ln2_b = 0.01 * jax.random.normal(ks[4], (1, D))

    scale = 0.05
    # Token-mix FeedForward(num_patch=N, hidden=T); stored as weight^T = (in, out).
    w1 = scale * jax.random.normal(ks[5], (N, T), jnp.float32)   # Linear(N->T)
    b1 = 0.01 * jax.random.normal(ks[6], (1, T))
    w2 = scale * jax.random.normal(ks[7], (T, N), jnp.float32)   # Linear(T->N)
    b2 = 0.01 * jax.random.normal(ks[8], (1, N))
    # Channel-mix FeedForward(dim=D, hidden=C); stored as weight^T = (in, out).
    w3 = scale * jax.random.normal(ks[9], (D, C), jnp.float32)   # Linear(D->C)
    b3 = jnp.zeros((1, C), jnp.float32)
    w4 = scale * jax.random.normal(jax.random.PRNGKey(42), (C, D), jnp.float32)  # Linear(C->D)
    b4 = jnp.zeros((1, D), jnp.float32)

    params = (ln1_w, ln1_b, w1, b1, w2, b2, ln2_w, ln2_b, w3, b3, w4, b4)

    ref = mixer_block_ref(x, params)

    # f32-operand MXU path: tight tolerance (exact-erf GELU, f32 everywhere).
    out_f32 = mixer_block(x, params, use_bf16_matmul=False)
    jax.block_until_ready(out_f32)
    err = float(jnp.max(jnp.abs(out_f32 - ref)))
    assert jnp.allclose(out_f32, ref, atol=1e-4, rtol=1e-4), err

    # Default path: bf16 MXU operands, f32 accumulation (looser tolerance by design).
    out_bf16 = mixer_block(x, params)
    jax.block_until_ready(out_bf16)
    err_bf = float(jnp.max(jnp.abs(out_bf16 - ref)))
    assert jnp.allclose(out_bf16, ref, atol=3e-2, rtol=3e-2), err_bf

    print("KERNEL_OK")
</pallas_src>

<mosaic_0001>
module attributes {stable_mosaic.version = 11 : i64} {
  func.func @_mixer_block_kernel(%arg0: i32, %arg1: memref<1x8x32xf32, #tpu.memory_space<vmem>>, %arg2: memref<1x32xf32, #tpu.memory_space<vmem>>, %arg3: memref<1x32xf32, #tpu.memory_space<vmem>>, %arg4: memref<8x128xf32, #tpu.memory_space<vmem>>, %arg5: memref<1x128xf32, #tpu.memory_space<vmem>>, %arg6: memref<128x8xf32, #tpu.memory_space<vmem>>, %arg7: memref<1x8xf32, #tpu.memory_space<vmem>>, %arg8: memref<1x32xf32, #tpu.memory_space<vmem>>, %arg9: memref<1x32xf32, #tpu.memory_space<vmem>>, %arg10: memref<32x128xf32, #tpu.memory_space<vmem>>, %arg11: memref<1x128xf32, #tpu.memory_space<vmem>>, %arg12: memref<128x32xf32, #tpu.memory_space<vmem>>, %arg13: memref<1x32xf32, #tpu.memory_space<vmem>>, %arg14: memref<1x8x32xf32, #tpu.memory_space<vmem>>) attributes {dimension_semantics = [#tpu.dimension_semantics<parallel>], iteration_bounds = array<i64: 2>, scalar_prefetch = 0 : i64, scratch_operands = 0 : i64, tpu.core_type = #tpu.core_type<tc>, window_params = [{transform_indices = @transform_0, window_bounds = array<i64: 1, 8, 32>}, {pipeline_mode = #tpu.pipeline_mode<synchronous>, transform_indices = @transform_1, window_bounds = array<i64: 1, 32>}, {pipeline_mode = #tpu.pipeline_mode<synchronous>, transform_indices = @transform_2, window_bounds = array<i64: 1, 32>}, {pipeline_mode = #tpu.pipeline_mode<synchronous>, transform_indices = @transform_3, window_bounds = array<i64: 8, 128>}, {pipeline_mode = #tpu.pipeline_mode<synchronous>, transform_indices = @transform_4, window_bounds = array<i64: 1, 128>}, {pipeline_mode = #tpu.pipeline_mode<synchronous>, transform_indices = @transform_5, window_bounds = array<i64: 128, 8>}, {pipeline_mode = #tpu.pipeline_mode<synchronous>, transform_indices = @transform_6, window_bounds = array<i64: 1, 8>}, {pipeline_mode = #tpu.pipeline_mode<synchronous>, transform_indices = @transform_7, window_bounds = array<i64: 1, 32>}, {pipeline_mode = #tpu.pipeline_mode<synchronous>, transform_indices = @transform_8, window_bounds = array<i64: 1, 32>}, {pipeline_mode = #tpu.pipeline_mode<synchronous>, transform_indices = @transform_9, window_bounds = array<i64: 32, 128>}, {pipeline_mode = #tpu.pipeline_mode<synchronous>, transform_indices = @transform_10, window_bounds = array<i64: 1, 128>}, {pipeline_mode = #tpu.pipeline_mode<synchronous>, transform_indices = @transform_11, window_bounds = array<i64: 128, 32>}, {pipeline_mode = #tpu.pipeline_mode<synchronous>, transform_indices = @transform_12, window_bounds = array<i64: 1, 32>}, {transform_indices = @transform_13, window_bounds = array<i64: 1, 8, 32>}]} {
    %c0 = arith.constant 0 : index
    %c0_0 = arith.constant 0 : index
    %c0_1 = arith.constant 0 : index
    %0 = vector.load %arg1[%c0, %c0_0, %c0_1] : memref<1x8x32xf32, #tpu.memory_space<vmem>>, vector<1x8x32xf32>
    %c0_2 = arith.constant 0 : index
    %c0_3 = arith.constant 0 : index
    %1 = vector.load %arg2[%c0_2, %c0_3] : memref<1x32xf32, #tpu.memory_space<vmem>>, vector<1x32xf32>
    %c0_4 = arith.constant 0 : index
    %c0_5 = arith.constant 0 : index
    %2 = vector.load %arg3[%c0_4, %c0_5] : memref<1x32xf32, #tpu.memory_space<vmem>>, vector<1x32xf32>
    %cst = arith.constant dense<0.000000e+00> : vector<1x8xf32>
    %3 = vector.multi_reduction <add>, %0, %cst [2] : vector<1x8x32xf32> to vector<1x8xf32>
    %4 = vector.shape_cast %3 : vector<1x8xf32> to vector<1x8x1xf32>
    %cst_6 = arith.constant 3.200000e+01 : f32
    %5 = vector.broadcast %cst_6 : f32 to vector<1x8x1xf32>
    %6 = arith.divf %4, %5 : vector<1x8x1xf32>
    %7 = vector.broadcast %6 : vector<1x8x1xf32> to vector<1x8x32xf32>
    %8 = arith.subf %0, %7 : vector<1x8x32xf32>
    %9 = vector.broadcast %6 : vector<1x8x1xf32> to vector<1x8x32xf32>
    %10 = arith.subf %0, %9 : vector<1x8x32xf32>
    %11 = arith.mulf %8, %10 : vector<1x8x32xf32>
    %cst_7 = arith.constant dense<0.000000e+00> : vector<1x8xf32>
    %12 = vector.multi_reduction <add>, %11, %cst_7 [2] : vector<1x8x32xf32> to vector<1x8xf32>
    %13 = vector.shape_cast %12 : vector<1x8xf32> to vector<1x8x1xf32>
    %cst_8 = arith.constant 3.200000e+01 : f32
    %14 = vector.broadcast %cst_8 : f32 to vector<1x8x1xf32>
    %15 = arith.divf %13, %14 : vector<1x8x1xf32>
    %16 = vector.broadcast %6 : vector<1x8x1xf32> to vector<1x8x32xf32>
    %17 = arith.subf %0, %16 : vector<1x8x32xf32>
    %cst_9 = arith.constant 9.99999974E-6 : f32
    %18 = vector.broadcast %cst_9 : f32 to vector<1x8x1xf32>
    %19 = arith.addf %15, %18 : vector<1x8x1xf32>
    %20 = math.rsqrt %19 : vector<1x8x1xf32>
    %21 = vector.broadcast %20 : vector<1x8x1xf32> to vector<1x8x32xf32>
    %22 = arith.mulf %17, %21 : vector<1x8x32xf32>
    %23 = vector.shape_cast %1 : vector<1x32xf32> to vector<1x1x32xf32>
    %24 = vector.broadcast %23 : vector<1x1x32xf32> to vector<1x8x32xf32>
    %25 = arith.mulf %22, %24 : vector<1x8x32xf32>
    %26 = vector.shape_cast %2 : vector<1x32xf32> to vector<1x1x32xf32>
    %27 = vector.broadcast %26 : vector<1x1x32xf32> to vector<1x8x32xf32>
    %28 = arith.addf %25, %27 : vector<1x8x32xf32>
    %29 = tpu.transpose %28, [0, 2, 1] : vector<1x8x32xf32> -> vector<1x32x8xf32>
    %30 = vector.shape_cast %29 : vector<1x32x8xf32> to vector<32x8xf32>
    %c0_10 = arith.constant 0 : index
    %c0_11 = arith.constant 0 : index
    %31 = vector.load %arg4[%c0_10, %c0_11] : memref<8x128xf32, #tpu.memory_space<vmem>>, vector<8x128xf32>
    %cst_12 = arith.constant dense<0.000000e+00> : vector<32x128xf32>
    %32 = tpu.matmul %30, %31, %cst_12 {dimension_numbers = #tpu.dot_dimension_numbers<[1], [0], [0], [1], [0, 0, 1, 1], [], []>} : vector<32x8xf32>, vector<8x128xf32>, vector<32x128xf32> -> vector<32x128xf32>
    %c0_13 = arith.constant 0 : index
    %c0_14 = arith.constant 0 : index
    %33 = vector.load %arg5[%c0_13, %c0_14] : memref<1x128xf32, #tpu.memory_space<vmem>>, vector<1x128xf32>
    %34 = vector.broadcast %33 : vector<1x128xf32> to vector<32x128xf32>
    %35 = arith.addf %32, %34 : vector<32x128xf32>
    %cst_15 = arith.constant 5.000000e-01 : f32
    %36 = vector.broadcast %cst_15 : f32 to vector<32x128xf32>
    %37 = arith.mulf %36, %35 : vector<32x128xf32>
    %cst_16 = arith.constant 0.707106769 : f32
    %38 = vector.broadcast %cst_16 : f32 to vector<32x128xf32>
    %39 = arith.mulf %35, %38 : vector<32x128xf32>
    %40 = math.erf %39 : vector<32x128xf32>
    %cst_17 = arith.constant 1.000000e+00 : f32
    %41 = vector.broadcast %cst_17 : f32 to vector<32x128xf32>
    %42 = arith.addf %41, %40 : vector<32x128xf32>
    %43 = arith.mulf %37, %42 : vector<32x128xf32>
    %c0_18 = arith.constant 0 : index
    %c0_19 = arith.constant 0 : index
    %44 = vector.load %arg6[%c0_18, %c0_19] : memref<128x8xf32, #tpu.memory_space<vmem>>, vector<128x8xf32>
    %cst_20 = arith.constant dense<0.000000e+00> : vector<32x8xf32>
    %45 = tpu.matmul %43, %44, %cst_20 {dimension_numbers = #tpu.dot_dimension_numbers<[1], [0], [0], [1], [0, 0, 1, 1], [], []>} : vector<32x128xf32>, vector<128x8xf32>, vector<32x8xf32> -> vector<32x8xf32>
    %c0_21 = arith.constant 0 : index
    %c0_22 = arith.constant 0 : index
    %46 = vector.load %arg7[%c0_21, %c0_22] : memref<1x8xf32, #tpu.memory_space<vmem>>, vector<1x8xf32>
    %47 = vector.broadcast %46 : vector<1x8xf32> to vector<32x8xf32>
    %48 = arith.addf %45, %47 : vector<32x8xf32>
    %49 = vector.shape_cast %48 : vector<32x8xf32> to vector<1x32x8xf32>
    %50 = tpu.transpose %49, [0, 2, 1] : vector<1x32x8xf32> -> vector<1x8x32xf32>
    %51 = arith.addf %0, %50 : vector<1x8x32xf32>
    %c0_23 = arith.constant 0 : index
    %c0_24 = arith.constant 0 : index
    %52 = vector.load %arg8[%c0_23, %c0_24] : memref<1x32xf32, #tpu.memory_space<vmem>>, vector<1x32xf32>
    %c0_25 = arith.constant 0 : index
    %c0_26 = arith.constant 0 : index
    %53 = vector.load %arg9[%c0_25, %c0_26] : memref<1x32xf32, #tpu.memory_space<vmem>>, vector<1x32xf32>
    %cst_27 = arith.constant dense<0.000000e+00> : vector<1x8xf32>
    %54 = vector.multi_reduction <add>, %51, %cst_27 [2] : vector<1x8x32xf32> to vector<1x8xf32>
    %55 = vector.shape_cast %54 : vector<1x8xf32> to vector<1x8x1xf32>
    %cst_28 = arith.constant 3.200000e+01 : f32
    %56 = vector.broadcast %cst_28 : f32 to vector<1x8x1xf32>
    %57 = arith.divf %55, %56 : vector<1x8x1xf32>
    %58 = vector.broadcast %57 : vector<1x8x1xf32> to vector<1x8x32xf32>
    %59 = arith.subf %51, %58 : vector<1x8x32xf32>
    %60 = vector.broadcast %57 : vector<1x8x1xf32> to vector<1x8x32xf32>
    %61 = arith.subf %51, %60 : vector<1x8x32xf32>
    %62 = arith.mulf %59, %61 : vector<1x8x32xf32>
    %cst_29 = arith.constant dense<0.000000e+00> : vector<1x8xf32>
    %63 = vector.multi_reduction <add>, %62, %cst_29 [2] : vector<1x8x32xf32> to vector<1x8xf32>
    %64 = vector.shape_cast %63 : vector<1x8xf32> to vector<1x8x1xf32>
    %cst_30 = arith.constant 3.200000e+01 : f32
    %65 = vector.broadcast %cst_30 : f32 to vector<1x8x1xf32>
    %66 = arith.divf %64, %65 : vector<1x8x1xf32>
    %67 = vector.broadcast %57 : vector<1x8x1xf32> to vector<1x8x32xf32>
    %68 = arith.subf %51, %67 : vector<1x8x32xf32>
    %cst_31 = arith.constant 9.99999974E-6 : f32
    %69 = vector.broadcast %cst_31 : f32 to vector<1x8x1xf32>
    %70 = arith.addf %66, %69 : vector<1x8x1xf32>
    %71 = math.rsqrt %70 : vector<1x8x1xf32>
    %72 = vector.broadcast %71 : vector<1x8x1xf32> to vector<1x8x32xf32>
    %73 = arith.mulf %68, %72 : vector<1x8x32xf32>
    %74 = vector.shape_cast %52 : vector<1x32xf32> to vector<1x1x32xf32>
    %75 = vector.broadcast %74 : vector<1x1x32xf32> to vector<1x8x32xf32>
    %76 = arith.mulf %73, %75 : vector<1x8x32xf32>
    %77 = vector.shape_cast %53 : vector<1x32xf32> to vector<1x1x32xf32>
    %78 = vector.broadcast %77 : vector<1x1x32xf32> to vector<1x8x32xf32>
    %79 = arith.addf %76, %78 : vector<1x8x32xf32>
    %80 = vector.shape_cast %79 : vector<1x8x32xf32> to vector<8x32xf32>
    %c0_32 = arith.constant 0 : index
    %c0_33 = arith.constant 0 : index
    %81 = vector.load %arg10[%c0_32, %c0_33] : memref<32x128xf32, #tpu.memory_space<vmem>>, vector<32x128xf32>
    %cst_34 = arith.constant dense<0.000000e+00> : vector<8x128xf32>
    %82 = tpu.matmul %80, %81, %cst_34 {dimension_numbers = #tpu.dot_dimension_numbers<[1], [0], [0], [1], [0, 0, 1, 1], [], []>} : vector<8x32xf32>, vector<32x128xf32>, vector<8x128xf32> -> vector<8x128xf32>
    %c0_35 = arith.constant 0 : index
    %c0_36 = arith.constant 0 : index
    %83 = vector.load %arg11[%c0_35, %c0_36] : memref<1x128xf32, #tpu.memory_space<vmem>>, vector<1x128xf32>
    %84 = vector.broadcast %83 : vector<1x128xf32> to vector<8x128xf32>
    %85 = arith.addf %82, %84 : vector<8x128xf32>
    %cst_37 = arith.constant 5.000000e-01 : f32
    %86 = vector.broadcast %cst_37 : f32 to vector<8x128xf32>
    %87 = arith.mulf %86, %85 : vector<8x128xf32>
    %cst_38 = arith.constant 0.707106769 : f32
    %88 = vector.broadcast %cst_38 : f32 to vector<8x128xf32>
    %89 = arith.mulf %85, %88 : vector<8x128xf32>
    %90 = math.erf %89 : vector<8x128xf32>
    %cst_39 = arith.constant 1.000000e+00 : f32
    %91 = vector.broadcast %cst_39 : f32 to vector<8x128xf32>
    %92 = arith.addf %91, %90 : vector<8x128xf32>
    %93 = arith.mulf %87, %92 : vector<8x128xf32>
    %c0_40 = arith.constant 0 : index
    %c0_41 = arith.constant 0 : index
    %94 = vector.load %arg12[%c0_40, %c0_41] : memref<128x32xf32, #tpu.memory_space<vmem>>, vector<128x32xf32>
    %cst_42 = arith.constant dense<0.000000e+00> : vector<8x32xf32>
    %95 = tpu.matmul %93, %94, %cst_42 {dimension_numbers = #tpu.dot_dimension_numbers<[1], [0], [0], [1], [0, 0, 1, 1], [], []>} : vector<8x128xf32>, vector<128x32xf32>, vector<8x32xf32> -> vector<8x32xf32>
    %c0_43 = arith.constant 0 : index
    %c0_44 = arith.constant 0 : index
    %96 = vector.load %arg13[%c0_43, %c0_44] : memref<1x32xf32, #tpu.memory_space<vmem>>, vector<1x32xf32>
    %97 = vector.broadcast %96 : vector<1x32xf32> to vector<8x32xf32>
    %98 = arith.addf %95, %97 : vector<8x32xf32>
    %99 = vector.shape_cast %98 : vector<8x32xf32> to vector<1x8x32xf32>
    %100 = arith.addf %51, %99 : vector<1x8x32xf32>
    %c0_45 = arith.constant 0 : index
    %c0_46 = arith.constant 0 : index
    %c0_47 = arith.constant 0 : index
    %101 = vector.load %arg14[%c0_45, %c0_46, %c0_47] : memref<1x8x32xf32, #tpu.memory_space<vmem>>, vector<1x8x32xf32>
    tpu.vector_store %arg14[%c0_45, %c0_46, %c0_47], %100 {strides = array<i32>} : memref<1x8x32xf32, #tpu.memory_space<vmem>>, vector<1x8x32xf32>,
    return
  }
  func.func @transform_0(%arg0: i32) -> (i32, i32, i32) {
    %c0_i32 = arith.constant 0 : i32
    %c0_i32_0 = arith.constant 0 : i32
    %c0_i32_1 = arith.constant 0 : i32
    return %arg0, %c0_i32, %c0_i32_0 : i32, i32, i32
  }
  func.func @transform_1(%arg0: i32) -> (i32, i32) {
    %c0_i32 = arith.constant 0 : i32
    %c0_i32_0 = arith.constant 0 : i32
    %c0_i32_1 = arith.constant 0 : i32
    return %c0_i32, %c0_i32_0 : i32, i32
  }
  func.func @transform_2(%arg0: i32) -> (i32, i32) {
    %c0_i32 = arith.constant 0 : i32
    %c0_i32_0 = arith.constant 0 : i32
    %c0_i32_1 = arith.constant 0 : i32
    return %c0_i32, %c0_i32_0 : i32, i32
  }
  func.func @transform_3(%arg0: i32) -> (i32, i32) {
    %c0_i32 = arith.constant 0 : i32
    %c0_i32_0 = arith.constant 0 : i32
    %c0_i32_1 = arith.constant 0 : i32
    return %c0_i32, %c0_i32_0 : i32, i32
  }
  func.func @transform_4(%arg0: i32) -> (i32, i32) {
    %c0_i32 = arith.constant 0 : i32
    %c0_i32_0 = arith.constant 0 : i32
    %c0_i32_1 = arith.constant 0 : i32
    return %c0_i32, %c0_i32_0 : i32, i32
  }
  func.func @transform_5(%arg0: i32) -> (i32, i32) {
    %c0_i32 = arith.constant 0 : i32
    %c0_i32_0 = arith.constant 0 : i32
    %c0_i32_1 = arith.constant 0 : i32
    return %c0_i32, %c0_i32_0 : i32, i32
  }
  func.func @transform_6(%arg0: i32) -> (i32, i32) {
    %c0_i32 = arith.constant 0 : i32
    %c0_i32_0 = arith.constant 0 : i32
    %c0_i32_1 = arith.constant 0 : i32
    return %c0_i32, %c0_i32_0 : i32, i32
  }
  func.func @transform_7(%arg0: i32) -> (i32, i32) {
    %c0_i32 = arith.constant 0 : i32
    %c0_i32_0 = arith.constant 0 : i32
    %c0_i32_1 = arith.constant 0 : i32
    return %c0_i32, %c0_i32_0 : i32, i32
  }
  func.func @transform_8(%arg0: i32) -> (i32, i32) {
    %c0_i32 = arith.constant 0 : i32
    %c0_i32_0 = arith.constant 0 : i32
    %c0_i32_1 = arith.constant 0 : i32
    return %c0_i32, %c0_i32_0 : i32, i32
  }
  func.func @transform_9(%arg0: i32) -> (i32, i32) {
    %c0_i32 = arith.constant 0 : i32
    %c0_i32_0 = arith.constant 0 : i32
    %c0_i32_1 = arith.constant 0 : i32
    return %c0_i32, %c0_i32_0 : i32, i32
  }
  func.func @transform_10(%arg0: i32) -> (i32, i32) {
    %c0_i32 = arith.constant 0 : i32
    %c0_i32_0 = arith.constant 0 : i32
    %c0_i32_1 = arith.constant 0 : i32
    return %c0_i32, %c0_i32_0 : i32, i32
  }
  func.func @transform_11(%arg0: i32) -> (i32, i32) {
    %c0_i32 = arith.constant 0 : i32
    %c0_i32_0 = arith.constant 0 : i32
    %c0_i32_1 = arith.constant 0 : i32
    return %c0_i32, %c0_i32_0 : i32, i32
  }
  func.func @transform_12(%arg0: i32) -> (i32, i32) {
    %c0_i32 = arith.constant 0 : i32
    %c0_i32_0 = arith.constant 0 : i32
    %c0_i32_1 = arith.constant 0 : i32
    return %c0_i32, %c0_i32_0 : i32, i32
  }
  func.func @transform_13(%arg0: i32) -> (i32, i32, i32) {
    %c0_i32 = arith.constant 0 : i32
    %c0_i32_0 = arith.constant 0 : i32
    %c0_i32_1 = arith.constant 0 : i32
    return %arg0, %c0_i32, %c0_i32_0 : i32, i32, i32
  }
}

</mosaic_0001>

<bundles_post_ra>
// kernel: tpu_custom_call.1
= control target key start
LH: loop header
LB: loop body
LE: loop exit
PB: predicated region body
PF: predicated region fallthrough
CT: control target
= control target key end

     0   :  { %s1667_s0 = inlined_call_operand.vmem [shape: f32[2,8,32], index: 0, kind: input, shape index: {}]   ;;  %s1668_s1 = inlined_call_operand.vmem [shape: f32[1,32], index: 1, kind: input, shape index: {}]   ;;  %s1669_s2 = inlined_call_operand.vmem [shape: f32[1,32], index: 2, kind: input, shape index: {}]   ;;  %s1670_s3 = inlined_call_operand.vmem [shape: f32[8,128], index: 3, kind: input, shape index: {}]   ;;  %s1671_s4 = inlined_call_operand.vmem [shape: f32[1,128], index: 4, kind: input, shape index: {}]   ;;  %s1672_s5 = inlined_call_operand.vmem [shape: f32[128,8], index: 5, kind: input, shape index: {}]   ;;  %s1673_s6 = inlined_call_operand.vmem [shape: f32[1,8], index: 6, kind: input, shape index: {}]   ;;  %s1674_s7 = inlined_call_operand.vmem [shape: f32[1,32], index: 7, kind: input, shape index: {}]   ;;  %s1675_s8 = inlined_call_operand.vmem [shape: f32[1,32], index: 8, kind: input, shape index: {}]   ;;  %s1676_s9 = inlined_call_operand.vmem [shape: f32[32,128], index: 9, kind: input, shape index: {}]   ;;  %s1677_s10 = inlined_call_operand.vmem [shape: f32[1,128], index: 10, kind: input, shape index: {}]   ;;  %s1678_s11 = inlined_call_operand.vmem [shape: f32[128,32], index: 11, kind: input, shape index: {}]   ;;  %s1679_s12 = inlined_call_operand.vmem [shape: f32[1,32], index: 12, kind: input, shape index: {}]   ;;  %s1680_s13 = inlined_call_operand.hbm [shape: f32[2,8,32], index: 13, kind: output, shape index: {}]  }
   0x1   :  { %1681 = sst [smem:[#allocation5_spill]] %s1667_s0 }
   0x2   :  { %1682 = sst [smem:[#allocation6_spill]] %s1668_s1 }
   0x3   :  { %1683 = sst [smem:[#allocation7_spill]] %s1669_s2 }
   0x4   :  { %1684 = sst [smem:[#allocation8_spill]] %s1670_s3 }
   0x5   :  { %18 = vsyncpa [#allocation3], 0 }
   0x6   :  { %20 = vsyncpa [#allocation3 + $0x1], 0  ;;  %s1405_s25 = smov 0   ;;  %s1407_s26 = smov 0  }
   0x7   :  { %s1409_s27 = smov 0   ;;  %s1411_s28 = smov 0  }
   0x8 LB: > { %s1426_s29 = sadd.s32 4294967295, %s1330_s28   ;;  %s1053_s30 = sadd.s32 4294967294, %s1330_s28   ;;  %s1330_s28 = sphi %s1411_s28, %s1694_s28   ;;  %s1326_s27 = sphi %s1409_s27, %s1693_s27   ;;  %s1322_s26 = sphi %s1407_s26, %s1692_s26   ;;  %s1318_s25 = sphi %s1405_s25, %s1691_s25  }
   0x9   : > { %s1430_s14 = sadd.s32 1, %s1330_s28   ;;  %s311_s15 = sadd.s32 1, %s1326_s27 }
   0xa   : > { %s308_s16 = ssub.s32 %s1330_s28, %s1430_s14  ;;  %p321_p0 = scmp.ne.s32.totalorder %s1326_s27, %s1322_s26 }
   0xb   : > { %p309_p1 = scmp.eq.s32.totalorder %s308_s16, 0  ;;  %p322_p2 = scmp.eq.s32.totalorder %s1426_s29, 1 }
   0xc   : > { %p327_p3 = scmp.ne.s32.totalorder %s1322_s26, %s1318_s25  ;;  %p328_p4 = scmp.eq.s32.totalorder %s1053_s30, 1 }
   0xd   : > { %s1441_s17 = scalar_select %p309_p1, %s1326_s27, %s311_s15  }
   0xe   : > { %p1443_p5 = por %p322_p2, %p321_p0  ;;  %p1447_p6 = por %p328_p4, %p327_p3 }
   0xf   : > { %p1056_p7 = scmp.ge.s32.totalorder %s1330_s28, 1  ;;  %p389_p8 = scmp.lt.s32.totalorder %s1330_s28, 3 }
  0x11   : > { %p390_p9 = pnand %p1056_p7, %p389_p8 }
  0x12   : > { %p432_p10 = scmp.lt.s32.totalorder (!%p390_p9), %s1426_s29, 1  ;;  %s1687_s0 = sld [smem:[#allocation5_spill]] (!%p390_p9) }
  0x13   : > { %393 = sbr.rel (%p390_p9) target bundleno = 1741 (0x6cd), region = 72  ;;  %s1688_s1 = sld [smem:[#allocation6_spill]] (!%p390_p9) }
  0x14   : > { %s1689_s2 = sld [smem:[#allocation7_spill]] (!%p390_p9)  ;;  %s429_s30 = sand.u32 (!%p390_p9), 1, %s1322_s26  }
  0x15   : > { %s1690_s3 = sld [smem:[#allocation8_spill]] (!%p390_p9)  ;;  %s1057_s15 = sshll.u32 (!%p390_p9), %s429_s30, 3 }
  0x16   : > { %s431_s22 = scalar_lea.vmem (!%p390_p9), [#allocation2], %s1057_s15 }
  0x17   : > { %s994_s23 = sshll.u32 (!%p390_p9), %s431_s22, 4  ;;  %s995_s23 = int_to_ptr.vmem [resolvable:$true] %s994_s23 }
  0x18   : > { %s433_s20 = scalar_select %p432_p10, %s1426_s29, 1  ;;  %vm439_vm0 = vcmask 261120   ;;  %v641_v17 = vld [vmem:[%s1672_s5 + $0x78] sm:$0xff]  ;;  %vm508_vm1 = vcmask 64512   ;;  %v640_v20 = vld [vmem:[%s1672_s5 + $0x70] sm:$0xff]  ;;  %v639_v21 = vld [vmem:[%s1672_s5 + $0x68] sm:$0xff] }
  0x19   : > { %v1059_v11 = vld [vmem:[%s1688_s1] ss:$0 sm:$0xff]  ;;  %v637_v25 = vld [vmem:[%s1672_s5 + $0x58] sm:$0xff]  ;;  %v636_v26 = vld [vmem:[%s1672_s5 + $0x50] sm:$0xff]  ;;  %vm1333_vm2 = vmmov 0  }
  0x1a   : > { %s1058_s21 = sshll.u32 %s433_s20, 3  ;;  %v1060_v13 = vld [vmem:[%s1689_s2] ss:$0 sm:$0xff]  ;;  %v635_v27 = vld [vmem:[%s1672_s5 + $0x48] sm:$0xff]  ;;  %v633_v29 = vld [vmem:[%s1672_s5 + $0x38] sm:$0xff]  ;;  %s981_s2 = scalar_lea.sflag [#allocation3], %s429_s30 }
  0x1b   : > { %s435_s24 = scalar_lea.vmem %s1687_s0, %s1058_s21  ;;  %v500_v15 = vld [vmem:[%s1690_s3] sm:$0xff]  ;;  %v632_v30 = vld [vmem:[%s1672_s5 + $0x30] sm:$0xff]  ;;  %v631_v31 = vld [vmem:[%s1672_s5 + $0x28] sm:$0xff]  ;;  %s1073_s21 = sshll.u32 %s1426_s29, 7 }
  0x1c   : > { %v1458_v0 = vld [vmem:[%s435_s24] sm:$0xff]  ;;  %1123 = vmatprep.subr.mxu1 %v500_v15  ;;  %v629_v33 = vld [vmem:[%s1672_s5 + $0x18] sm:$0xff]  ;;  %v628_v34 = vld [vmem:[%s1672_s5 + $0x10] sm:$0xff]  ;;  %s992_s1 = scalar_lea.hbm %s1680_s13, %s1073_s21  ;;  %s1270_s3 = scalar_lea.vmem %s995_s23, 128 }
  0x1d   : > { %v440_v1 = vsel %vm439_vm0, %v1458_v0, 0.0  ;;  %1124 = vmatpush3.msra.mxu1 %v500_v15  ;;  %v638_v24 = vld [vmem:[%s1672_s5 + $0x60] sm:$0xff]  ;;  %v627_v35 = vld [vmem:[%s1672_s5 + $0x8] sm:$0xff]  ;;  %p1271_p11 = scmp.ne.s32.totalorder %s995_s23, %s1270_s3  ;;  %s1334_s29 = smov [#allocation2]  }
  0x1e   : > { %441 = vadd.xlane.f32.xlu0 %v440_v1  ;;  %1131 = vmatprep.subr.mxu1 %v641_v17  ;;  %v634_v28 = vld [vmem:[%s1672_s5 + $0x40] sm:$0xff]  ;;  %s1274_s15 = sshll.u32 %s1334_s29, 4  ;;  %s1275_s15 = int_to_ptr.vmem [resolvable:$false] %s1274_s15 }
  0x1f   : > { %v630_v32 = vld [vmem:[%s1672_s5 + $0x20] sm:$0xff]  ;;  %p1272_p12 = pnand %p1271_p11, %p1443_p5  ;;  %s1276_s16 = scalar_lea.vmem %s1275_s15, 256 }
  0x20   : > { %v626_v36 = vld [vmem:[%s1672_s5] sm:$0xff]  ;;  %p1277_p0 = scmp.lt.s32.totalorder %s995_s23, %s1275_s15  ;;  %p1278_p1 = scmp.lt.s32.totalorder %s1276_s16, %s1270_s3 }
  0x21   : > { %v1061_v37 = vld [vmem:[%s1671_s4] ss:$0 sm:$0xff]  ;;  %p1273_p13 = pneg %p1272_p12 }
  0x22   : > { %p1279_p2 = por %p1278_p1, %p1277_p0 }
  0x24   : > { %p1280_p3 = pnand %p1279_p2, %p1273_p13 }
  0xa7   : > { %v442_v2 = vpop.xlane.xlu0 %441 }
  0xa8   : > { %v444_v3 = vmul.f32 0.03125, %v442_v2 }
  0xaa   : > { %v445_v4 = vsub.f32 %v1458_v0, %v444_v3 }
  0xac   : > { %v446_v5 = vmul.f32 %v445_v4, %v445_v4 }
  0xae   : > { %v447_v6 = vsel %vm439_vm0, %v446_v5, 0.0 }
  0xaf   : > { %448 = vadd.xlane.f32.xlu0 %v447_v6 }
 0x138   : > { %v449_v7 = vpop.xlane.xlu0 %448 }
 0x139   : > { %v450_v8 = vmul.f32 0.03125, %v449_v7 }
 0x13b   : > { %v451_v9 = vadd.f32 1e-05, %v450_v8 }
 0x13d   : > { %1256 = vrsqrt.f32 %v451_v9 }
 0x14a   : > { %v1257_v10 = vpop.eup %1256 }
 0x14b   : > { %v453_v12 = vmul.f32 %v1257_v10, %v445_v4  ;;  %v1066_v4 = vld [vmem:[%s1673_s6] ss:$0 sm:$0xff] }
 0x14d   : > { %v460_v14 = vmul.f32 %v1059_v11, %v453_v12 }
 0x14f   : > { %v467_v16 = vadd.f32 %v1060_v13, %v460_v14 }
 0x151   : > { %468 = vxpose.xlu1.b32.start.end [1/1] (short) (narrow) %v467_v16, 32 }
 0x1cd   : > { %v484_v18 = vpop.trf.xlu1 }
 0x1ce   : > { %1125 = vmatprep.mubr.msk.f32.mxu1 %vm508_vm1, %v484_v18 }
 0x1d1   : > { %v485_v19 = vpop.trf.xlu1 }
 0x1d2   : > { %1126 = vmatmul.mubr.msk.f32.vlgmr.msra.gmra.mxu1 %vm508_vm1, %v485_v19 }
 0x1d3   : > { %1132 = vmatpush3.msra.mxu1 %v641_v17 }
 0x1d4   : > { %1133 = vmatprep.subr.mxu1 %v640_v20 }
 0x1d5   : > { %v486_v22 = vpop.trf.xlu1  ;;  %1134 = vmatpush3.msra.mxu1 %v640_v20  ;;  %v799_v20 = vld [vmem:[%s1676_s9 + $0x18] sm:$0xff] }
 0x1d6   : > { %1128 = vmatprep.mubr.msk.f32.mxu1 %vm508_vm1, %v486_v22  ;;  %1135 = vmatprep.subr.mxu1 %v639_v21  ;;  %v797_v22 = vld [vmem:[%s1676_s9 + $0x8] sm:$0xff] }
 0x1d7   : > { %1136 = vmatpush3.msra.mxu1 %v639_v21  ;;  %v1332_v21 = vmov 0.0  }
 0x1d8   : > { %1137 = vmatprep.subr.mxu1 %v638_v24  ;;  %1169 = vmatprep.subr.mxu0 %v1332_v21 }
 0x1d9   : > { %v487_v23 = vpop.trf.xlu1  ;;  %1138 = vmatpush3.msra.mxu1 %v638_v24  ;;  %1177 = vmatprep.mubr.msk.f32.mxu0 %vm1333_vm2, %v1332_v21 }
 0x1da   : > { %1129 = vmatmul.mubr.msk.f32.gmra.mxu1 %vm508_vm1, %v487_v23  ;;  %1139 = vmatprep.subr.mxu1 %v637_v25  ;;  %v796_v23 = vld [vmem:[%s1676_s9] sm:$0xff] }
 0x1db   : > { %1140 = vmatpush3.msra.mxu1 %v637_v25  ;;  %1170 = vmatpush3.msra.mxu0 %v799_v20 }
 0x1dc   : > { %1141 = vmatprep.subr.mxu1 %v636_v26  ;;  %1171 = vmatprep.subr.mxu0 %v1332_v21 }
 0x1dd   : > { %1142 = vmatpush3.msra.mxu1 %v636_v26 }
 0x1de   : > { %1143 = vmatprep.subr.mxu1 %v635_v27 }
 0x1df   : > { %1144 = vmatpush3.msra.mxu1 %v635_v27 }
 0x1e0   : > { %1145 = vmatprep.subr.mxu1 %v634_v28 }
 0x1e1   : > { %1146 = vmatpush3.msra.mxu1 %v634_v28  ;;  %v1067_v28 = vld [vmem:[%s1674_s7] ss:$0 sm:$0xff] }
 0x1e2   : > { %1147 = vmatprep.subr.mxu1 %v633_v29 }
 0x1e3   : > { %1148 = vmatpush3.msra.mxu1 %v633_v29 }
 0x1e4   : > { %1149 = vmatprep.subr.mxu1 %v632_v30 }
 0x1e5   : > { %1150 = vmatpush3.msra.mxu1 %v632_v30  ;;  %v1068_v30 = vld [vmem:[%s1675_s8] ss:$0 sm:$0xff] }
 0x1e6   : > { %1151 = vmatprep.subr.mxu1 %v631_v31 }
 0x1e7   : > { %1152 = vmatpush3.msra.mxu1 %v631_v31 }
 0x1e8   : > { %1153 = vmatprep.subr.mxu1 %v630_v32 }
 0x1e9   : > { %1154 = vmatpush3.msra.mxu1 %v630_v32 }
 0x1ea   : > { %1155 = vmatprep.subr.mxu1 %v629_v33 }
 0x1eb   : > { %1156 = vmatpush3.msra.mxu1 %v629_v33  ;;  %v900_v33 = vld [vmem:[%s1678_s11 + $0x78] sm:$0xff] }
 0x1ec   : > { %1157 = vmatprep.subr.mxu1 %v628_v34 }
 0x1ed   : > { %1158 = vmatpush3.msra.mxu1 %v628_v34  ;;  %v899_v34 = vld [vmem:[%s1678_s11 + $0x70] sm:$0xff] }
 0x1ee   : > { %1159 = vmatprep.subr.mxu1 %v627_v35 }
 0x1ef   : > { %1160 = vmatpush3.msra.mxu1 %v627_v35  ;;  %v898_v35 = vld [vmem:[%s1678_s11 + $0x68] sm:$0xff] }
 0x1f0   : > { %1161 = vmatprep.subr.mxu1 %v626_v36 }
 0x1f1   : > { %1162 = vmatpush3.msra.mxu1 %v626_v36  ;;  %v897_v36 = vld [vmem:[%s1678_s11 + $0x60] sm:$0xff] }
 0x292   : > { %v1127_v38 = vpop.f32.mrf.mxu1 }
 0x293   : > { %v593_v39 = vadd.f32 %v1127_v38, %v1061_v37  ;;  %v895_v38 = vld [vmem:[%s1678_s11 + $0x50] sm:$0xff] }
 0x294   : > { %v587_v40 = vpop.f32.mrf.mxu1 }
 0x295   : > { %v611_v41 = vmul.f32 0.70710677, %v593_v39  ;;  %v588_v42 = vadd.f32 %v1061_v37, %v587_v40  ;;  %v607_v55 = vmul.f32 0.5, %v593_v39  ;;  %v894_v39 = vld [vmem:[%s1678_s11 + $0x48] sm:$0xff]  ;;  %v893_v40 = vld [vmem:[%s1678_s11 + $0x40] sm:$0xff] }
 0x297   : > { %1258 = verf.f32 %v611_v41  ;;  %v610_v43 = vmul.f32 0.70710677, %v588_v42  ;;  %v606_v53 = vmul.f32 0.5, %v588_v42  ;;  %v892_v41 = vld [vmem:[%s1678_s11 + $0x38] sm:$0xff]  ;;  %v891_v42 = vld [vmem:[%s1678_s11 + $0x30] sm:$0xff] }
 0x299   : > { %1260 = verf.f32 %v610_v43  ;;  %v890_v43 = vld [vmem:[%s1678_s11 + $0x28] sm:$0xff] }
 0x29a   : > { %v1130_v44 = vpop.f32.mrf.mxu1 }
 0x29b   : > { %v603_v45 = vadd.f32 %v1130_v44, %v1061_v37  ;;  %v889_v44 = vld [vmem:[%s1678_s11 + $0x20] sm:$0xff] }
 0x29c   : > { %v597_v46 = vpop.f32.mrf.mxu1 }
 0x29d   : > { %v613_v47 = vmul.f32 0.70710677, %v603_v45  ;;  %v598_v48 = vadd.f32 %v1061_v37, %v597_v46  ;;  %v609_v63 = vmul.f32 0.5, %v603_v45  ;;  %v896_v37 = vld [vmem:[%s1678_s11 + $0x58] sm:$0xff]  ;;  %v887_v46 = vld [vmem:[%s1678_s11 + $0x10] sm:$0xff] }
 0x29e   : > { %v888_v45 = vld [vmem:[%s1678_s11 + $0x18] sm:$0xff] }
 0x29f   : > { %1262 = verf.f32 %v613_v47  ;;  %v612_v49 = vmul.f32 0.70710677, %v598_v48  ;;  %v608_v61 = vmul.f32 0.5, %v598_v48  ;;  %v886_v47 = vld [vmem:[%s1678_s11 + $0x8] sm:$0xff]  ;;  %v885_v48 = vld [vmem:[%s1678_s11] sm:$0xff] }
 0x2a1   : > { %1264 = verf.f32 %v612_v49  ;;  %v1069_v49 = vld [vmem:[%s1677_s10] ss:$0 sm:$0xff] }
 0x2a4   : > { %v1259_v50 = vpop.eup %1258 }
 0x2a5   : > { %v619_v52 = vadd.f32 1.0, %v1259_v50 }
 0x2a6   : > { %v1261_v51 = vpop.eup %1260 }
 0x2a7   : > { %v618_v54 = vadd.f32 1.0, %v1261_v51  ;;  %v623_v57 = vmul.f32 %v619_v52, %v607_v55 }
 0x2a9   : > { %v622_v56 = vmul.f32 %v618_v54, %v606_v53 }
 0x2ab   : > { %1163 = vmatprep.mubr.f32.mxu1 %v622_v56 }
 0x2ac   : > { %v1263_v58 = vpop.eup %1262  ;;  %1164 = vmatmul.mubr.f32.vlgmr.msra.gmra.mxu1 %v623_v57 }
 0x2ad   : > { %v621_v60 = vadd.f32 1.0, %v1263_v58  ;;  %v1071_v58 = vld [vmem:[%s1679_s12] ss:$0 sm:$0xff] }
 0x2ae   : > { %v1265_v59 = vpop.eup %1264 }
 0x2af   : > { %v620_v62 = vadd.f32 1.0, %v1265_v59  ;;  %v625_v2 = vmul.f32 %v621_v60, %v609_v63 }
 0x2b1   : > { %v624_v1 = vmul.f32 %v620_v62, %v608_v61 }
 0x2b3   : > { %1166 = vmatprep.mubr.f32.mxu1 %v624_v1 }
 0x2b4   : > { %1167 = vmatmul.mubr.f32.gmra.mxu1 %v625_v2 }
 0x36c   : > { %v1165_v3 = vpop.f32.mrf.mxu1 }
 0x36d   : > { %v721_v7 = vadd.f32 %v1165_v3, %v1066_v4 }
 0x36e   : > { %v715_v5 = vpop.f32.mrf.mxu1 }
 0x36f   : > { %v716_v6 = vadd.f32 %v1066_v4, %v715_v5 }
 0x371   : > { %734 = vxpose.xlu1.b32.start [1/4] (short) (narrow) %v716_v6, 8 }
 0x374   : > { %v1168_v8 = vpop.f32.mrf.mxu1 }
 0x375   : > { %735 = vxpose.xlu1.b32.cont [2/4] (short) (narrow) %v721_v7, 8  ;;  %v731_v11 = vadd.f32 %v1168_v8, %v1066_v4 }
 0x376   : > { %v725_v9 = vpop.f32.mrf.mxu1 }
 0x377   : > { %v726_v10 = vadd.f32 %v1066_v4, %v725_v9 }
 0x379   : > { %736 = vxpose.xlu1.b32.cont [3/4] (short) (narrow) %v726_v10, 8 }
 0x37d   : > { %737 = vxpose.xlu1.b32.end [4/4] (short) (narrow) %v731_v11, 8 }
 0x3ed   : > { %v750_v12 = vpop.trf.xlu1 }
 0x3ee   : > { %v1528_v13 = vadd.f32 %v750_v12, %v1458_v0  ;;  %v798_v0 = vld [vmem:[%s1676_s9 + $0x10] sm:$0xff] }
 0x3ef   : > { %1172 = vmatpush3.msra.mxu0 %v798_v0 }
 0x3f0   : > { %v769_v14 = vsel %vm439_vm0, %v1528_v13, 0.0  ;;  %1173 = vmatprep.subr.mxu0 %v1332_v21 }
 0x3f1   : > { %770 = vadd.xlane.f32.xlu0 %v769_v14  ;;  %1174 = vmatpush3.msra.mxu0 %v797_v22 }
 0x3f2   : > { %1175 = vmatprep.subr.mxu0 %v1332_v21 }
 0x3f3   : > { %1176 = vmatpush3.msra.mxu0 %v796_v23 }
 0x3f4   : > { %1180 = vmatprep.subr.mxu0 %v1332_v21 }
 0x47a   : > { %v771_v15 = vpop.xlane.xlu0 %770 }
 0x47b   : > { %v772_v16 = vmul.f32 0.03125, %v771_v15 }
 0x47d   : > { %v773_v17 = vsub.f32 %v1528_v13, %v772_v16 }
 0x47f   : > { %v774_v18 = vmul.f32 %v773_v17, %v773_v17 }
 0x481   : > { %v775_v19 = vsel %vm439_vm0, %v774_v18, 0.0 }
 0x482   : > { %776 = vadd.xlane.f32.xlu0 %v775_v19 }
 0x50b   : > { %v777_v24 = vpop.xlane.xlu0 %776 }
 0x50c   : > { %v778_v25 = vmul.f32 0.03125, %v777_v24 }
 0x50e   : > { %v779_v26 = vadd.f32 1e-05, %v778_v25 }
 0x510   : > { %1266 = vrsqrt.f32 %v779_v26 }
 0x51d   : > { %v1267_v27 = vpop.eup %1266 }
 0x51e   : > { %v781_v29 = vmul.f32 %v1267_v27, %v773_v17 }
 0x520   : > { %v788_v31 = vmul.f32 %v1067_v28, %v781_v29 }
 0x522   : > { %v795_v32 = vadd.f32 %v1068_v30, %v788_v31 }
 0x524   : > { %1178 = vmatmul.mubr.msk.f32.vlgmr.msra.gmra.mxu0 %vm439_vm0, %v795_v32 }
 0x525   : > { %1181 = vmatpush3.msra.mxu0 %v900_v33  ;;  %1212 = vmatprep.mubr.msk.f32.mxu0 %vm1333_vm2, %v1332_v21 }
 0x526   : > { %1182 = vmatprep.subr.mxu0 %v1332_v21 }
 0x527   : > { %1183 = vmatpush3.msra.mxu0 %v899_v34 }
 0x528   : > { %1184 = vmatprep.subr.mxu0 %v1332_v21 }
 0x529   : > { %1185 = vmatpush3.msra.mxu0 %v898_v35 }
 0x52a   : > { %1186 = vmatprep.subr.mxu0 %v1332_v21 }
 0x52b   : > { %1187 = vmatpush3.msra.mxu0 %v897_v36 }
 0x52c   : > { %1188 = vmatprep.subr.mxu0 %v1332_v21 }
 0x52d   : > { %1189 = vmatpush3.msra.mxu0 %v896_v37 }
 0x52e   : > { %1190 = vmatprep.subr.mxu0 %v1332_v21 }
 0x52f   : > { %1191 = vmatpush3.msra.mxu0 %v895_v38 }
 0x530   : > { %1192 = vmatprep.subr.mxu0 %v1332_v21 }
 0x531   : > { %1193 = vmatpush3.msra.mxu0 %v894_v39 }
 0x532   : > { %1194 = vmatprep.subr.mxu0 %v1332_v21 }
 0x533   : > { %1195 = vmatpush3.msra.mxu0 %v893_v40 }
 0x534   : > { %1196 = vmatprep.subr.mxu0 %v1332_v21 }
 0x535   : > { %1197 = vmatpush3.msra.mxu0 %v892_v41 }
 0x536   : > { %1198 = vmatprep.subr.mxu0 %v1332_v21 }
 0x537   : > { %1199 = vmatpush3.msra.mxu0 %v891_v42 }
 0x538   : > { %1200 = vmatprep.subr.mxu0 %v1332_v21 }
 0x539   : > { %1201 = vmatpush3.msra.mxu0 %v890_v43 }
 0x53a   : > { %1202 = vmatprep.subr.mxu0 %v1332_v21 }
 0x53b   : > { %1203 = vmatpush3.msra.mxu0 %v889_v44 }
 0x53c   : > { %1204 = vmatprep.subr.mxu0 %v1332_v21 }
 0x53d   : > { %1205 = vmatpush3.msra.mxu0 %v888_v45 }
 0x53e   : > { %1206 = vmatprep.subr.mxu0 %v1332_v21 }
 0x53f   : > { %1207 = vmatpush3.msra.mxu0 %v887_v46 }
 0x540   : > { %1208 = vmatprep.subr.mxu0 %v1332_v21 }
 0x541   : > { %1209 = vmatpush3.msra.mxu0 %v886_v47 }
 0x542   : > { %1210 = vmatprep.subr.mxu0 %v1332_v21 }
 0x543   : > { %1211 = vmatpush3.msra.mxu0 %v885_v48 }
 0x5e4   : > { %v876_v50 = vpop.f32.mrf.mxu0 }
 0x5e5   : > { %v877_v51 = vadd.f32 %v1069_v49, %v876_v50 }
 0x5e6   : > { %v1179_v52 = vpop.f32.mrf.mxu0 }
 0x5e7   : > { %v881_v53 = vmul.f32 0.70710677, %v877_v51  ;;  %v880_v55 = vmul.f32 0.5, %v877_v51 }
 0x5e9   : > { %1268 = verf.f32 %v881_v53 }
 0x5f6   : > { %v1269_v54 = vpop.eup %1268 }
 0x5f7   : > { %v883_v56 = vadd.f32 1.0, %v1269_v54 }
 0x5f9   : > { %v884_v57 = vmul.f32 %v883_v56, %v880_v55 }
 0x5fb   : > { %1213 = vmatmul.mubr.f32.vlgmr.msra.gmra.mxu0 %v884_v57 }
 0x6bb   : > { %v974_v59 = vpop.f32.mrf.mxu0 }
 0x6bc   : > { %v975_v60 = vadd.f32 %v1071_v58, %v974_v59 }
 0x6bd   : > { %v1214_v61 = vpop.f32.mrf.mxu0 }
 0x6be   : > { %v978_v62 = vadd.f32 %v975_v60, %v1528_v13 }
 0x6c0   : > { %979 = vst.msk [vmem:[%s431_s22] sm:$0xff] %vm439_vm0, %v978_v62 }
 0x6c1   : > { %1283 = shalt.err (!%p1280_p3)
}
 0x6c2   : > { %s1284_s0 = scalar_lea.hbm %s992_s1, 128  ;;  %s1288_s21 = scalar_lea.hbm %s1680_s13, 256 }
 0x6c3   : > { %p1285_p4 = scmp.ne.s32.totalorder %s992_s1, %s1284_s0  ;;  %p1289_p9 = scmp.lt.s32.totalorder %s992_s1, %s1680_s13 }
 0x6c4   : > { %p1290_p10 = scmp.lt.s32.totalorder %s1288_s21, %s1284_s0 }
 0x6c5   : > { %p1286_p7 = pnand %p1285_p4, %p1443_p5 }
 0x6c6   : > { %p1291_p11 = por %p1290_p10, %p1289_p9 }
 0x6c7   : > { %p1287_p8 = pneg %p1286_p7 }
 0x6c9   : > { %p1292_p12 = pnand %p1291_p11, %p1287_p8 }
 0x6cb   : > { %1295 = shalt.err (!%p1292_p12)
}
 0x6cc   : > { %1215 = dma.vmem_to_hbm [thread:$0]  (%p1443_p5), %s995_s23, 128, %s992_s1, %s981_s2  }
 0x6cd PF: > { %p1221_p13 = scmp.ge.s32.totalorder %s1330_s28, 2  ;;  %s1006_s3 = sand.u32 1, %s1318_s25  }
 0x6ce   : > { %s1007_s29 = scalar_lea.sflag [#allocation3], %s1006_s3 }
 0x6cf   : > { %p1218_p0 = pnand %p1221_p13, %p1447_p6 }
 0x6d1   : > { %p1219_p1 = pneg %p1218_p0 }
 0x6d3   : > { %1313 = dma.done.wait (%p1219_p1), %s1007_s29, 128  }
 0x6d4   : > { %1315 = vsyncadd (%p1219_p1), %s1007_s29, 4294967168  ;;  %p23_p2 = scmp.ge.s32.totalorder %s1430_s14, 4   ;;  %s1691_s25 = smov %s1322_s26 }
 0x6d5   : > { %s1692_s26 = smov %s1326_s27  ;;  %s1693_s27 = smov %s1441_s17 }
 0x6d6   : > { %s1694_s28 = smov %s1430_s14  ;;  %25 = sbr.rel (!%p23_p2) target bundleno = 8 (0x8), region = 107 }
 0x6db   :  { %1012 = vsyncpa [#allocation3], 1 }
 0x6dc   :  { %1014 = vsyncpa [#allocation3 + $0x1], 1 }

</bundles_post_ra>
